<compile_context>
chip_gen: v7x
topology: tpu7x:2x2x1
jax: 0.10.0
libtpu: 0.0.40
codegen_flags: <defaults>
</compile_context>

<pallas_src>
import jax
import jax.numpy as jnp
from jax.experimental import pallas as pl
from jax.experimental.pallas import tpu as pltpu

# ----------------------- model dims (PyTorch defaults) -----------------------
IN_FEATURES = 784            # 1 x 28 x 28
HIDDEN = 200
NCLS = 10
HIDDEN_PAD = 256             # lane-dense (and one 256-wide MXU N pass on v6e/v7x)
NCLS_PAD = 128               # lane-dense output store
TILE_M = 256                 # batch rows per grid step (v6e/v7x MXU M; fine on v5e)
B = 4                        # example batch


# ------------------------------ fused MLP kernel -----------------------------
def mlp_kernel(x_ref, w1_ref, b1_ref, w2_ref, b2_ref, o_ref):
    # x_ref : (tm, 784) caller dtype   w1_ref: (784, 256) bf16   b1_ref: (1, 256) f32
    # w2_ref: (256, 128) bf16          b2_ref: (1, 128)  f32     o_ref : (tm, 128) f32
    x = x_ref[...].astype(jnp.bfloat16)               # cast on the VMEM tile
    h = jnp.dot(x, w1_ref[...], preferred_element_type=jnp.float32) + b1_ref[...]
    h = jnp.maximum(h, 0.0)                           # ReLU (on f32 accumulator)
    o_ref[...] = (jnp.dot(h.astype(jnp.bfloat16), w2_ref[...],
                          preferred_element_type=jnp.float32) + b2_ref[...])


# ------------------------------ params packing -------------------------------
def pack_params(w1_torch, b1, w2_torch, b2):
    """PyTorch Linear layouts (out,in) -> transposed (in,out), zero-padded to
    lane-dense dims, weights cast to bf16 (done once, outside the hot path)."""
    w1 = jnp.zeros((IN_FEATURES, HIDDEN_PAD), jnp.bfloat16)
    w1 = w1.at[:, :HIDDEN].set(w1_torch.T.astype(jnp.bfloat16))
    b1p = jnp.zeros((1, HIDDEN_PAD), jnp.float32).at[:, :HIDDEN].set(b1)
    w2 = jnp.zeros((HIDDEN_PAD, NCLS_PAD), jnp.bfloat16)
    w2 = w2.at[:HIDDEN, :NCLS].set(w2_torch.T.astype(jnp.bfloat16))
    b2p = jnp.zeros((1, NCLS_PAD), jnp.float32).at[:, :NCLS].set(b2)
    return dict(w1=w1, b1=b1p, w2=w2, b2=b2p)


# --------------------------------- forward -----------------------------------
def fedavg_mlp_forward(x, params, tile_m=TILE_M):
    """x: (B, in_features) or (B, C, H, W) with C*H*W == in_features."""
    if x.ndim == 4:
        x = x.reshape(x.shape[0], -1)                  # torch .view(B, -1)
    assert x.shape[-1] == IN_FEATURES, (
        f"flattened feature count {x.shape[-1]} != {IN_FEATURES}")
    batch = x.shape[0]

    # Batch tiling: whole batch in one step if small, else tile_m rows per step
    # (weights stay VMEM-resident across steps via constant index_map).
    if batch <= tile_m:
        tm, padded_b = batch, batch
    else:
        tm = tile_m
        padded_b = int(pl.cdiv(batch, tm)) * tm
        if padded_b != batch:
            x = jnp.pad(x, ((0, padded_b - batch), (0, 0)))
    grid = (padded_b // tm,)

    w1, b1, w2, b2 = params['w1'], params['b1'], params['w2'], params['b2']
    cost = pl.CostEstimate(
        flops=2 * padded_b * (IN_FEATURES * HIDDEN_PAD + HIDDEN_PAD * NCLS_PAD),
        transcendentals=0,
        bytes_accessed=(x.size * x.dtype.itemsize
                        + w1.size * 2 + w2.size * 2
                        + b1.size * 4 + b2.size * 4
                        + padded_b * NCLS_PAD * 4),
    )

    out = pl.pallas_call(
        mlp_kernel,
        out_shape=jax.ShapeDtypeStruct((padded_b, NCLS_PAD), jnp.float32),
        grid=grid,
        in_specs=[
            pl.BlockSpec((tm, IN_FEATURES), lambda i: (i, 0)),          # x tiles
            pl.BlockSpec((IN_FEATURES, HIDDEN_PAD), lambda i: (0, 0)),  # W1 resident
            pl.BlockSpec((1, HIDDEN_PAD), lambda i: (0, 0)),            # b1 resident
            pl.BlockSpec((HIDDEN_PAD, NCLS_PAD), lambda i: (0, 0)),     # W2 resident
            pl.BlockSpec((1, NCLS_PAD), lambda i: (0, 0)),              # b2 resident
        ],
        out_specs=pl.BlockSpec((tm, NCLS_PAD), lambda i: (i, 0)),
        compiler_params=pltpu.CompilerParams(
            dimension_semantics=("parallel",)),        # v7x: 2 TCs split the batch
        cost_estimate=cost,
    )(x, w1, b1, w2, b2)

    return out[:batch, :NCLS]                          # drop batch + class padding


# ----------------------------------- main -------------------------------------
if __name__ == "__main__":
    key = jax.random.PRNGKey(0)
    ks = jax.random.split(key, 5)

    # deterministic synthetic parameters in PyTorch layouts (f32 "master" weights)
    w1_t = 0.05 * jax.random.normal(ks[0], (HIDDEN, IN_FEATURES), jnp.float32)  # fc1.weight
    b1 = 0.05 * jax.random.normal(ks[1], (HIDDEN,), jnp.float32)
    w2_t = 0.10 * jax.random.normal(ks[2], (NCLS, HIDDEN), jnp.float32)         # fc2.weight
    b2 = 0.05 * jax.random.normal(ks[3], (NCLS,), jnp.float32)
    x = jax.random.normal(ks[4], (B, 1, 28, 28), jnp.float32)                   # 4-D input branch

    params = pack_params(w1_t, b1, w2_t, b2)
    out = jax.block_until_ready(fedavg_mlp_forward(x, params))

    # pure-JAX f32 reference of the PyTorch forward
    def ref_forward(xr):
        f = xr.reshape(xr.shape[0], -1)
        h = jnp.maximum(f @ w1_t.T + b1, 0.0)
        return h @ w2_t.T + b2

    ref = ref_forward(x)
    assert out.shape == (B, NCLS)
    assert bool(jnp.allclose(out, ref, atol=5e-2, rtol=5e-2))  # bf16 operands vs f32 ref
    print("KERNEL_OK")
</pallas_src>

<mosaic_0001>
module attributes {stable_mosaic.version = 11 : i64} {
  func.func @mlp_kernel(%arg0: i32, %arg1: memref<4x784xf32, #tpu.memory_space<vmem>>, %arg2: memref<784x256xbf16, #tpu.memory_space<vmem>>, %arg3: memref<1x256xf32, #tpu.memory_space<vmem>>, %arg4: memref<256x128xbf16, #tpu.memory_space<vmem>>, %arg5: memref<1x128xf32, #tpu.memory_space<vmem>>, %arg6: memref<4x128xf32, #tpu.memory_space<vmem>>) attributes {dimension_semantics = [#tpu.dimension_semantics<parallel>], iteration_bounds = array<i64: 1>, scalar_prefetch = 0 : i64, scratch_operands = 0 : i64, tpu.core_type = #tpu.core_type<tc>, window_params = [{transform_indices = @transform_0, window_bounds = array<i64: 4, 784>}, {pipeline_mode = #tpu.pipeline_mode<synchronous>, transform_indices = @transform_1, window_bounds = array<i64: 784, 256>}, {pipeline_mode = #tpu.pipeline_mode<synchronous>, transform_indices = @transform_2, window_bounds = array<i64: 1, 256>}, {pipeline_mode = #tpu.pipeline_mode<synchronous>, transform_indices = @transform_3, window_bounds = array<i64: 256, 128>}, {pipeline_mode = #tpu.pipeline_mode<synchronous>, transform_indices = @transform_4, window_bounds = array<i64: 1, 128>}, {transform_indices = @transform_5, window_bounds = array<i64: 4, 128>}]} {
    %c0 = arith.constant 0 : index
    %c0_0 = arith.constant 0 : index
    %0 = vector.load %arg1[%c0, %c0_0] : memref<4x784xf32, #tpu.memory_space<vmem>>, vector<4x784xf32>
    %1 = arith.truncf %0 : vector<4x784xf32> to vector<4x784xbf16>
    %c0_1 = arith.constant 0 : index
    %c0_2 = arith.constant 0 : index
    %2 = vector.load %arg2[%c0_1, %c0_2] : memref<784x256xbf16, #tpu.memory_space<vmem>>, vector<784x256xbf16>
    %cst = arith.constant dense<0.000000e+00> : vector<4x256xf32>
    %3 = tpu.matmul %1, %2, %cst {dimension_numbers = #tpu.dot_dimension_numbers<[1], [0], [0], [1], [0, 0, 1, 1], [], []>} : vector<4x784xbf16>, vector<784x256xbf16>, vector<4x256xf32> -> vector<4x256xf32>
    %c0_3 = arith.constant 0 : index
    %c0_4 = arith.constant 0 : index
    %4 = vector.load %arg3[%c0_3, %c0_4] : memref<1x256xf32, #tpu.memory_space<vmem>>, vector<1x256xf32>
    %5 = vector.broadcast %4 : vector<1x256xf32> to vector<4x256xf32>
    %6 = arith.addf %3, %5 : vector<4x256xf32>
    %cst_5 = arith.constant 0.000000e+00 : f32
    %7 = vector.broadcast %cst_5 : f32 to vector<4x256xf32>
    %8 = arith.maximumf %6, %7 : vector<4x256xf32>
    %9 = arith.truncf %8 : vector<4x256xf32> to vector<4x256xbf16>
    %c0_6 = arith.constant 0 : index
    %c0_7 = arith.constant 0 : index
    %10 = vector.load %arg4[%c0_6, %c0_7] : memref<256x128xbf16, #tpu.memory_space<vmem>>, vector<256x128xbf16>
    %cst_8 = arith.constant dense<0.000000e+00> : vector<4x128xf32>
    %11 = tpu.matmul %9, %10, %cst_8 {dimension_numbers = #tpu.dot_dimension_numbers<[1], [0], [0], [1], [0, 0, 1, 1], [], []>} : vector<4x256xbf16>, vector<256x128xbf16>, vector<4x128xf32> -> vector<4x128xf32>
    %c0_9 = arith.constant 0 : index
    %c0_10 = arith.constant 0 : index
    %12 = vector.load %arg5[%c0_9, %c0_10] : memref<1x128xf32, #tpu.memory_space<vmem>>, vector<1x128xf32>
    %13 = vector.broadcast %12 : vector<1x128xf32> to vector<4x128xf32>
    %14 = arith.addf %11, %13 : vector<4x128xf32>
    %c0_11 = arith.constant 0 : index
    %c0_12 = arith.constant 0 : index
    %15 = vector.load %arg6[%c0_11, %c0_12] : memref<4x128xf32, #tpu.memory_space<vmem>>, vector<4x128xf32>
    tpu.vector_store %arg6[%c0_11, %c0_12], %14 {strides = array<i32>} : memref<4x128xf32, #tpu.memory_space<vmem>>, vector<4x128xf32>,
    return
  }
  func.func @transform_0(%arg0: i32) -> (i32, i32) {
    %c0_i32 = arith.constant 0 : i32
    %c0_i32_0 = arith.constant 0 : i32
    return %arg0, %c0_i32 : i32, i32
  }
  func.func @transform_1(%arg0: i32) -> (i32, i32) {
    %c0_i32 = arith.constant 0 : i32
    %c0_i32_0 = arith.constant 0 : i32
    %c0_i32_1 = arith.constant 0 : i32
    return %c0_i32, %c0_i32_0 : i32, i32
  }
  func.func @transform_2(%arg0: i32) -> (i32, i32) {
    %c0_i32 = arith.constant 0 : i32
    %c0_i32_0 = arith.constant 0 : i32
    %c0_i32_1 = arith.constant 0 : i32
    return %c0_i32, %c0_i32_0 : i32, i32
  }
  func.func @transform_3(%arg0: i32) -> (i32, i32) {
    %c0_i32 = arith.constant 0 : i32
    %c0_i32_0 = arith.constant 0 : i32
    %c0_i32_1 = arith.constant 0 : i32
    return %c0_i32, %c0_i32_0 : i32, i32
  }
  func.func @transform_4(%arg0: i32) -> (i32, i32) {
    %c0_i32 = arith.constant 0 : i32
    %c0_i32_0 = arith.constant 0 : i32
    %c0_i32_1 = arith.constant 0 : i32
    return %c0_i32, %c0_i32_0 : i32, i32
  }
  func.func @transform_5(%arg0: i32) -> (i32, i32) {
    %c0_i32 = arith.constant 0 : i32
    %c0_i32_0 = arith.constant 0 : i32
    return %arg0, %c0_i32 : i32, i32
  }
}

</mosaic_0001>

<bundles_post_ra>
// kernel: tpu_custom_call.1
= control target key start
LH: loop header
LB: loop body
LE: loop exit
PB: predicated region body
PF: predicated region fallthrough
CT: control target
= control target key end

     0   :  { %10 = vsyncpa [#allocation3], 0  ;;  %s1567_s0 = inlined_call_operand.hbm [shape: f32[4,784], index: 0, kind: input, shape index: {}]   ;;  %s1568_s1 = inlined_call_operand.hbm [shape: bf16[784,256], index: 1, kind: input, shape index: {}]   ;;  %s1569_s2 = inlined_call_operand.vmem [shape: f32[1,256], index: 2, kind: input, shape index: {}]   ;;  %s1570_s3 = inlined_call_operand.hbm [shape: bf16[256,128], index: 3, kind: input, shape index: {}]   ;;  %s1571_s4 = inlined_call_operand.vmem [shape: f32[1,128], index: 4, kind: input, shape index: {}]   ;;  %s1572_s5 = inlined_call_operand.hbm [shape: f32[4,128], index: 5, kind: output, shape index: {}]  }
   0x1   :  { %11 = vsyncpa [#allocation6], 0 }
   0x2   :  { %12 = vsyncpa [#allocation4], 0  ;;  %s1462_s18 = smov [#allocation5]   ;;  %s1368_s22 = scalar_lea.hbm %s1568_s1, 12544 }
   0x3   :  { %s28_s19 = sshll.u32 %s1462_s18, 4  ;;  %p1369_p0 = scmp.ne.s32.totalorder %s1568_s1, %s1368_s22  ;;  %s29_s19 = int_to_ptr.vmem [resolvable:$true] %s28_s19 }
   0x4   :  { %p1372_p1 = scmp.lt.u32.totalorder %s1368_s22, %s1568_s1 }
   0x6   :  { %p1374_p2 = pnand %p1372_p1, %p1369_p0 }
   0x8   :  { %1377 = shalt.err (!%p1374_p2)
}
   0x9   :  { %s1378_s27 = scalar_lea.vmem %s29_s19, 12544  ;;  %p1383_p4 = scmp.lt.s32.totalorder %s29_s19, %s29_s19 }
   0xa   :  { %p1379_p3 = scmp.ne.s32.totalorder %s29_s19, %s1378_s27  ;;  %p1384_p5 = scmp.lt.s32.totalorder %s1378_s27, %s1378_s27 }
   0xc   :  { %p1385_p6 = por %p1384_p5, %p1383_p4 }
   0xe   :  { %p1386_p7 = pnand %p1385_p6, %p1379_p3 }
  0x10   :  { %1389 = shalt.err (!%p1386_p7)
}
  0x11   :  { %s1463_s28 = smov 128   ;;  %s1464_s29 = smov 8  }
  0x12   :  { %34 = dma.hbm_to_vmem [thread:$0]  %s1568_s1, 12544, %s29_s19, [#allocation6], %s1463_s28, %s1463_s28, %s1464_s29  }
  0x13   :  { %s1465_s7 = smov [#allocation2]   ;;  %s1466_s9 = smov [#allocation7]  }
  0x14   :  { %s19_s8 = sshll.u32 %s1465_s7, 4  ;;  %s42_s10 = sshll.u32 %s1466_s9, 4  ;;  %s20_s8 = int_to_ptr.vmem [resolvable:$true] %s19_s8  ;;  %s43_s10 = int_to_ptr.vmem [resolvable:$true] %s42_s10 }
  0x15   :  { %s1390_s13 = scalar_lea.hbm %s1567_s0, 448 }
  0x16   :  { %p1391_p8 = scmp.ne.s32.totalorder %s1567_s0, %s1390_s13  ;;  %p1394_p9 = scmp.lt.u32.totalorder %s1390_s13, %s1567_s0 }
  0x18   :  { %p1396_p10 = pnand %p1394_p9, %p1391_p8 }
  0x1a   :  { %1399 = shalt.err (!%p1396_p10)
}
  0x1b   :  { %s1400_s1 = scalar_lea.vmem %s20_s8, 448  ;;  %p1405_p12 = scmp.lt.s32.totalorder %s20_s8, %s20_s8 }
  0x1c   :  { %p1401_p11 = scmp.ne.s32.totalorder %s20_s8, %s1400_s1  ;;  %p1406_p13 = scmp.lt.s32.totalorder %s1400_s1, %s1400_s1 }
  0x1e   :  { %p1407_p0 = por %p1406_p13, %p1405_p12 }
  0x20   :  { %p1408_p1 = pnand %p1407_p0, %p1401_p11 }
  0x22   :  { %1411 = shalt.err (!%p1408_p1)
}
  0x23   :  { %22 = dma.hbm_to_vmem [thread:$0]  %s1567_s0, 448, %s20_s8, [#allocation3]  }
  0x24   :  { %s1412_s22 = scalar_lea.hbm %s1570_s3, 2048 }
  0x25   :  { %p1413_p2 = scmp.ne.s32.totalorder %s1570_s3, %s1412_s22  ;;  %p1416_p3 = scmp.lt.u32.totalorder %s1412_s22, %s1570_s3 }
  0x27   :  { %p1418_p4 = pnand %p1416_p3, %p1413_p2 }
  0x29   :  { %1421 = shalt.err (!%p1418_p4)
}
  0x2a   :  { %s1422_s27 = scalar_lea.vmem %s43_s10, 2048  ;;  %p1427_p6 = scmp.lt.s32.totalorder %s43_s10, %s43_s10 }
  0x2b   :  { %p1423_p5 = scmp.ne.s32.totalorder %s43_s10, %s1422_s27  ;;  %p1428_p7 = scmp.lt.s32.totalorder %s1422_s27, %s1422_s27 }
  0x2d   :  { %p1429_p8 = por %p1428_p7, %p1427_p6 }
  0x2f   :  { %p1430_p9 = pnand %p1429_p8, %p1423_p5 }
  0x31   :  { %1433 = shalt.err (!%p1430_p9)
}
  0x32   :  { %s1467_s0 = smov 64   ;;  %s1468_s28 = smov 4  }
  0x33   :  { %48 = dma.hbm_to_vmem [thread:$0]  %s1570_s3, 2048, %s43_s10, [#allocation6], %s1467_s0, %s1467_s0, %s1468_s28  }
  0x34   :  { %1456 = dma.done.wait [#allocation3], 448  }
  0x35   :  { %1457 = vsyncadd [#allocation3], 4294966848 }
  0x36   :  { %1458 = dma.done.wait [#allocation6], 14592  }
  0x37   :  { %1459 = vsyncadd [#allocation6], 4294952704  ;;  %v1202_v0 = vld [vmem:[#allocation5 + $0x104] ss:$8 sps:$4 sm:$0xff]   ;;  %v1204_v1 = vld [vmem:[#allocation5 + $0x100] ss:$8 sps:$4 sm:$0xff]  }
  0x38   :  { %726 = vmatprep.subr.bf16.mxu0 %v1202_v0  ;;  %v1205_v2 = vld [vmem:[#allocation5 + $0x114] ss:$8 sps:$4 sm:$0xff]   ;;  %v1207_v3 = vld [vmem:[#allocation5 + $0x110] ss:$8 sps:$4 sm:$0xff]   ;;  %v1208_v4 = vld [vmem:[#allocation5 + $0x124] ss:$8 sps:$4 sm:$0xff]  }
  0x39   :  { %727 = vmatpush1.bf16.msra.mxu0 %v1204_v1  ;;  %v1210_v5 = vld [vmem:[#allocation5 + $0x120] ss:$8 sps:$4 sm:$0xff]   ;;  %v1211_v6 = vld [vmem:[#allocation5 + $0x134] ss:$8 sps:$4 sm:$0xff]   ;;  %v1213_v7 = vld [vmem:[#allocation5 + $0x130] ss:$8 sps:$4 sm:$0xff]  }
  0x3a   :  { %728 = vmatprep.subr.bf16.mxu0 %v1205_v2  ;;  %v1214_v8 = vld [vmem:[#allocation5 + $0x144] ss:$8 sps:$4 sm:$0xff]   ;;  %v1216_v9 = vld [vmem:[#allocation5 + $0x140] ss:$8 sps:$4 sm:$0xff]   ;;  %v1217_v10 = vld [vmem:[#allocation5 + $0x154] ss:$8 sps:$4 sm:$0xff]  }
  0x3b   :  { %v1219_v11 = vld [vmem:[#allocation5 + $0x150] ss:$8 sps:$4 sm:$0xff]   ;;  %v1244_v12 = vld [vmem:[#allocation5 + $0x4] ss:$8 sps:$4 sm:$0xff]   ;;  %v1246_v13 = vld [vmem:[#allocation5] ss:$8 sps:$4 sm:$0xff]  }
  0x3c   :  { %v1220_v14 = vld [vmem:[#allocation5 + $0x164] ss:$8 sps:$4 sm:$0xff]   ;;  %685 = vmatprep.subr.bf16.mxu1 %v1244_v12  ;;  %v1250_v15 = vld [vmem:[#allocation5 + $0x14] ss:$8 sps:$4 sm:$0xff]   ;;  %v1252_v16 = vld [vmem:[#allocation5 + $0x10] ss:$8 sps:$4 sm:$0xff]  }
  0x3d   :  { %729 = vmatpush1.bf16.msra.mxu0 %v1207_v3  ;;  %686 = vmatpush1.bf16.msra.mxu1 %v1246_v13  ;;  %v1222_v17 = vld [vmem:[#allocation5 + $0x160] ss:$8 sps:$4 sm:$0xff]   ;;  %v1223_v18 = vld [vmem:[#allocation5 + $0x174] ss:$8 sps:$4 sm:$0xff]   ;;  %v1256_v19 = vld [vmem:[#allocation5 + $0x24] ss:$8 sps:$4 sm:$0xff]  }
  0x3e   :  { %730 = vmatprep.subr.bf16.mxu0 %v1208_v4  ;;  %687 = vmatprep.subr.bf16.mxu1 %v1250_v15  ;;  %v1537_v20 = vld [vmem:[#allocation2 + $0x8] sm:$0xff]  ;;  %v1258_v22 = vld [vmem:[#allocation5 + $0x20] ss:$8 sps:$4 sm:$0xff]   ;;  %v1263_v24 = vld [vmem:[#allocation5 + $0x34] ss:$8 sps:$4 sm:$0xff]   ;;  %vm681_vm0 = vcmask 130048  }
  0x3f   :  { %v1225_v21 = vld [vmem:[#allocation5 + $0x170] ss:$8 sps:$4 sm:$0xff]   ;;  %v69_v23 = vcombine.high %v1537_v20, %v1537_v20  ;;  %v1226_v25 = vld [vmem:[#allocation5 + $0x184] ss:$8 sps:$4 sm:$0xff]   ;;  %v1228_v27 = vld [vmem:[#allocation5 + $0x180] ss:$8 sps:$4 sm:$0xff]   ;;  %v76_v61 = vpack.c.bf16 %v1537_v20, %v1537_v20 }
  0x40   :  { %v1265_v28 = vld [vmem:[#allocation5 + $0x30] ss:$8 sps:$4 sm:$0xff]   ;;  %v1269_v29 = vld [vmem:[#allocation5 + $0x44] ss:$8 sps:$4 sm:$0xff]   ;;  %v1229_v30 = vld [vmem:[#allocation5 + $0x194] ss:$8 sps:$4 sm:$0xff]  }
  0x41   :  { %731 = vmatpush1.bf16.msra.mxu0 %v1210_v5  ;;  %688 = vmatpush1.bf16.msra.mxu1 %v1252_v16  ;;  %v77_v26 = vpack.c.bf16 %v69_v23, %v69_v23  ;;  %v1231_v31 = vld [vmem:[#allocation5 + $0x190] ss:$8 sps:$4 sm:$0xff]   ;;  %v1271_v32 = vld [vmem:[#allocation5 + $0x40] ss:$8 sps:$4 sm:$0xff]   ;;  %v1275_v33 = vld [vmem:[#allocation5 + $0x54] ss:$8 sps:$4 sm:$0xff]  }
  0x42   :  { %732 = vmatprep.subr.bf16.mxu0 %v1211_v6  ;;  %689 = vmatprep.subr.bf16.mxu1 %v1256_v19  ;;  %v1232_v34 = vld [vmem:[#allocation5 + $0x1a4] ss:$8 sps:$4 sm:$0xff]   ;;  %v1234_v35 = vld [vmem:[#allocation5 + $0x1a0] ss:$8 sps:$4 sm:$0xff]   ;;  %v1277_v36 = vld [vmem:[#allocation5 + $0x50] ss:$8 sps:$4 sm:$0xff]  }
  0x43   :  { %758 = vmatprep.mubr.bf16.mxu0 %v77_v26  ;;  %v1281_v37 = vld [vmem:[#allocation5 + $0x64] ss:$8 sps:$4 sm:$0xff]   ;;  %v1235_v38 = vld [vmem:[#allocation5 + $0x1b4] ss:$8 sps:$4 sm:$0xff]   ;;  %v1237_v39 = vld [vmem:[#allocation5 + $0x1b0] ss:$8 sps:$4 sm:$0xff]  }
  0x44   :  { %v1283_v40 = vld [vmem:[#allocation5 + $0x60] ss:$8 sps:$4 sm:$0xff]   ;;  %v1287_v41 = vld [vmem:[#allocation5 + $0x74] ss:$8 sps:$4 sm:$0xff]   ;;  %v1238_v42 = vld [vmem:[#allocation5 + $0x1c4] ss:$8 sps:$4 sm:$0xff]  }
  0x45   :  { %733 = vmatpush1.bf16.msra.mxu0 %v1213_v7  ;;  %690 = vmatpush1.bf16.msra.mxu1 %v1258_v22  ;;  %v1240_v43 = vld [vmem:[#allocation5 + $0x1c0] ss:$8 sps:$4 sm:$0xff]   ;;  %v1289_v44 = vld [vmem:[#allocation5 + $0x70] ss:$8 sps:$4 sm:$0xff]   ;;  %v1293_v45 = vld [vmem:[#allocation5 + $0x84] ss:$8 sps:$4 sm:$0xff]  }
  0x46   :  { %734 = vmatprep.subr.bf16.mxu0 %v1214_v8  ;;  %691 = vmatprep.subr.bf16.mxu1 %v1263_v24  ;;  %v1241_v46 = vld [vmem:[#allocation5 + $0x1d4] ss:$8 sps:$4 sm:$0xff]   ;;  %v1243_v47 = vld [vmem:[#allocation5 + $0x1d0] ss:$8 sps:$4 sm:$0xff]   ;;  %v1295_v48 = vld [vmem:[#allocation5 + $0x80] ss:$8 sps:$4 sm:$0xff]  }
  0x47   :  { %v1299_v49 = vld [vmem:[#allocation5 + $0x94] ss:$8 sps:$4 sm:$0xff]   ;;  %v1247_v50 = vld [vmem:[#allocation5 + $0x1e4] ss:$8 sps:$4 sm:$0xff]   ;;  %v1249_v51 = vld [vmem:[#allocation5 + $0x1e0] ss:$8 sps:$4 sm:$0xff]  }
  0x48   :  { %v1301_v52 = vld [vmem:[#allocation5 + $0x90] ss:$8 sps:$4 sm:$0xff]   ;;  %v1305_v53 = vld [vmem:[#allocation5 + $0xa4] ss:$8 sps:$4 sm:$0xff]   ;;  %v1253_v54 = vld [vmem:[#allocation5 + $0x1f4] ss:$8 sps:$4 sm:$0xff]  }
  0x49   :  { %735 = vmatpush1.bf16.msra.mxu0 %v1216_v9  ;;  %692 = vmatpush1.bf16.msra.mxu1 %v1265_v28  ;;  %v1255_v55 = vld [vmem:[#allocation5 + $0x1f0] ss:$8 sps:$4 sm:$0xff]   ;;  %v1307_v56 = vld [vmem:[#allocation5 + $0xa0] ss:$8 sps:$4 sm:$0xff]   ;;  %v1311_v57 = vld [vmem:[#allocation5 + $0xb4] ss:$8 sps:$4 sm:$0xff]  }
  0x4a   :  { %736 = vmatprep.subr.bf16.mxu0 %v1217_v10  ;;  %693 = vmatprep.subr.bf16.mxu1 %v1269_v29  ;;  %v1262_v58 = vld [vmem:[#allocation5 + $0x204] ss:$8 sps:$4 sm:$0xff]   ;;  %v1260_v59 = vld [vmem:[#allocation5 + $0x200] ss:$8 sps:$4 sm:$0xff]   ;;  %v1313_v62 = vld [vmem:[#allocation5 + $0xb0] ss:$8 sps:$4 sm:$0xff]  }
  0x4b   :  { %v61_v60 = vld [vmem:[#allocation2] sm:$0xff]  ;;  %v1268_v1 = vld [vmem:[#allocation5 + $0x214] ss:$8 sps:$4 sm:$0xff]   ;;  %v1266_v3 = vld [vmem:[#allocation5 + $0x210] ss:$8 sps:$4 sm:$0xff]   ;;  %s1470_s8 = smov [#allocation8]  }
  0x4c   :  { %v68_v63 = vcombine.high %v61_v60, %v61_v60  ;;  %v1317_v0 = vld [vmem:[#allocation5 + $0xc4] ss:$8 sps:$4 sm:$0xff]   ;;  %v1319_v4 = vld [vmem:[#allocation5 + $0xc0] ss:$8 sps:$4 sm:$0xff]   ;;  %v1543_v5 = vld [vmem:[#allocation2 + $0x10] sm:$0xff]  ;;  %v74_v22 = vpack.c.bf16 %v61_v60, %v61_v60  ;;  %s1035_s9 = sshll.u32 %s1470_s8, 4  ;;  %s1036_s9 = int_to_ptr.vmem [resolvable:$true] %s1035_s9 }
  0x4d   :  { %737 = vmatpush1.bf16.msra.mxu0 %v1219_v11  ;;  %694 = vmatpush1.bf16.msra.mxu1 %v1271_v32  ;;  %v1323_v6 = vld [vmem:[#allocation5 + $0xd4] ss:$8 sps:$4 sm:$0xff]   ;;  %v70_v7 = vcombine.high %v1543_v5, %v1543_v5  ;;  %v1274_v8 = vld [vmem:[#allocation5 + $0x224] ss:$8 sps:$4 sm:$0xff]   ;;  %v1272_v9 = vld [vmem:[#allocation5 + $0x220] ss:$8 sps:$4 sm:$0xff]   ;;  %p1439_p11 = scmp.lt.s32.totalorder %s1036_s9, %s1036_s9 }
  0x4e   :  { %738 = vmatprep.subr.bf16.mxu0 %v1220_v14  ;;  %695 = vmatprep.subr.bf16.mxu1 %v1275_v33  ;;  %v75_v2 = vpack.c.bf16 %v68_v63, %v68_v63  ;;  %v1325_v11 = vld [vmem:[#allocation5 + $0xd0] ss:$8 sps:$4 sm:$0xff]   ;;  %v1329_v12 = vld [vmem:[#allocation5 + $0xe4] ss:$8 sps:$4 sm:$0xff]   ;;  %v1280_v13 = vld [vmem:[#allocation5 + $0x234] ss:$8 sps:$4 sm:$0xff]  }
  0x4f   :  { %v79_v10 = vpack.c.bf16 %v70_v7, %v70_v7  ;;  %v1331_v14 = vld [vmem:[#allocation5 + $0xe0] ss:$8 sps:$4 sm:$0xff]   ;;  %v1278_v15 = vld [vmem:[#allocation5 + $0x230] ss:$8 sps:$4 sm:$0xff]   ;;  %v1335_v16 = vld [vmem:[#allocation5 + $0xf4] ss:$8 sps:$4 sm:$0xff]  }
  0x50   :  { %717 = vmatprep.mubr.bf16.mxu1 %v75_v2  ;;  %v1284_v19 = vld [vmem:[#allocation5 + $0x240] ss:$8 sps:$4 sm:$0xff]   ;;  %v1347_v20 = vld [vmem:[#allocation5 + $0x304] ss:$8 sps:$4 sm:$0xff]   ;;  %v1290_v24 = vld [vmem:[#allocation5 + $0x250] ss:$8 sps:$4 sm:$0xff]  }
  0x51   :  { %739 = vmatpush1.bf16.msra.mxu0 %v1222_v17  ;;  %696 = vmatpush1.bf16.msra.mxu1 %v1277_v36  ;;  %v1286_v17 = vld [vmem:[#allocation5 + $0x244] ss:$8 sps:$4 sm:$0xff]   ;;  %v1345_v23 = vld [vmem:[#allocation5 + $0x300] ss:$8 sps:$4 sm:$0xff]   ;;  %v64_v28 = vld [vmem:[#allocation2 + $0x18] sm:$0xf] }
  0x52   :  { %740 = vmatprep.subr.bf16.mxu0 %v1223_v18  ;;  %697 = vmatprep.subr.bf16.mxu1 %v1281_v37  ;;  %v1337_v18 = vld [vmem:[#allocation5 + $0xf0] ss:$8 sps:$4 sm:$0xff]   ;;  %v1298_v26 = vld [vmem:[#allocation5 + $0x264] ss:$8 sps:$4 sm:$0xff]   ;;  %v1296_v29 = vld [vmem:[#allocation5 + $0x260] ss:$8 sps:$4 sm:$0xff]  }
  0x53   :  { %v1353_v32 = vld [vmem:[#allocation7] sm:$0xff]   ;;  %v1355_v36 = vld [vmem:[#allocation7 + $0x8] sm:$0xff]   ;;  %v1308_v37 = vld [vmem:[#allocation5 + $0x280] ss:$8 sps:$4 sm:$0xff]   ;;  %s1434_s10 = scalar_lea.vmem %s1036_s9, 64 }
  0x54   :  { %v1302_v33 = vld [vmem:[#allocation5 + $0x270] ss:$8 sps:$4 sm:$0xff]   ;;  %v1366_v63 = vld [vmem:[#allocation7 + $0x78] sm:$0xff]   ;;  %p1435_p10 = scmp.ne.s32.totalorder %s1036_s9, %s1434_s10  ;;  %p1440_p12 = scmp.lt.s32.totalorder %s1434_s10, %s1434_s10 }
  0x55   :  { %741 = vmatpush1.bf16.msra.mxu0 %v1225_v21  ;;  %698 = vmatpush1.bf16.msra.mxu1 %v1283_v40  ;;  %v1292_v21 = vld [vmem:[#allocation5 + $0x254] ss:$8 sps:$4 sm:$0xff]   ;;  %v1357_v40 = vld [vmem:[#allocation7 + $0x10] sm:$0xff]  }
  0x56   :  { %742 = vmatprep.subr.bf16.mxu0 %v1226_v25  ;;  %699 = vmatprep.subr.bf16.mxu1 %v1287_v41  ;;  %v1352_v25 = vld [vmem:[#allocation7 + $0x40] sm:$0xff]   ;;  %v1363_v60 = vld [vmem:[#allocation7 + $0x28] sm:$0xff]   ;;  %p1441_p13 = por %p1440_p12, %p1439_p11 }
  0x57   :  { %v1314_v41 = vld [vmem:[#allocation5 + $0x290] ss:$8 sps:$4 sm:$0xff]  }
  0x58   :  { %p1442_p0 = pnand %p1441_p13, %p1435_p10 }
  0x59   :  { %743 = vmatpush1.bf16.msra.mxu0 %v1228_v27  ;;  %700 = vmatpush1.bf16.msra.mxu1 %v1289_v44  ;;  %v1469_v27 = vmov 0   ;;  %v1328_v44 = vld [vmem:[#allocation5 + $0x2b4] ss:$8 sps:$4 sm:$0xff]  }
  0x5a   :  { %744 = vmatprep.subr.bf16.mxu0 %v1229_v30  ;;  %701 = vmatprep.subr.bf16.mxu1 %v1293_v45  ;;  %v1304_v30 = vld [vmem:[#allocation5 + $0x274] ss:$8 sps:$4 sm:$0xff]   ;;  %v1326_v45 = vld [vmem:[#allocation5 + $0x2b0] ss:$8 sps:$4 sm:$0xff]  }
  0x5d   :  { %745 = vmatpush1.bf16.msra.mxu0 %v1231_v31  ;;  %702 = vmatpush1.bf16.msra.mxu1 %v1295_v48  ;;  %v80_v31 = vpack.c.bf16 %v64_v28, %v64_v28  ;;  %v1340_v48 = vld [vmem:[#allocation5 + $0x2d4] ss:$8 sps:$4 sm:$0xff]  }
  0x5e   :  { %746 = vmatprep.subr.bf16.mxu0 %v1232_v34  ;;  %703 = vmatprep.subr.bf16.mxu1 %v1299_v49  ;;  %v1354_v34 = vld [vmem:[#allocation7 + $0x48] sm:$0xff]  }
  0x5f   :  { %v1338_v49 = vld [vmem:[#allocation5 + $0x2d0] ss:$8 sps:$4 sm:$0xff]  }
  0x61   :  { %747 = vmatpush1.bf16.msra.mxu0 %v1234_v35  ;;  %704 = vmatpush1.bf16.msra.mxu1 %v1301_v52  ;;  %v1310_v35 = vld [vmem:[#allocation5 + $0x284] ss:$8 sps:$4 sm:$0xff]   ;;  %v1350_v52 = vld [vmem:[#allocation5 + $0x2f4] ss:$8 sps:$4 sm:$0xff]  }
  0x62   :  { %748 = vmatprep.subr.bf16.mxu0 %v1235_v38  ;;  %705 = vmatprep.subr.bf16.mxu1 %v1305_v53  ;;  %v1356_v38 = vld [vmem:[#allocation7 + $0x50] sm:$0xff]   ;;  %v1348_v53 = vld [vmem:[#allocation5 + $0x2f0] ss:$8 sps:$4 sm:$0xff]  }
  0x65   :  { %749 = vmatpush1.bf16.msra.mxu0 %v1237_v39  ;;  %706 = vmatpush1.bf16.msra.mxu1 %v1307_v56  ;;  %v1316_v39 = vld [vmem:[#allocation5 + $0x294] ss:$8 sps:$4 sm:$0xff]   ;;  %v1359_v56 = vld [vmem:[#allocation7 + $0x18] sm:$0xff]  }
  0x66   :  { %750 = vmatprep.subr.bf16.mxu0 %v1238_v42  ;;  %707 = vmatprep.subr.bf16.mxu1 %v1311_v57  ;;  %v1322_v42 = vld [vmem:[#allocation5 + $0x2a4] ss:$8 sps:$4 sm:$0xff]   ;;  %v1360_v57 = vld [vmem:[#allocation7 + $0x60] sm:$0xff]  }
  0x69   :  { %751 = vmatpush1.bf16.msra.mxu0 %v1240_v43  ;;  %708 = vmatpush1.bf16.msra.mxu1 %v1313_v62  ;;  %v1320_v43 = vld [vmem:[#allocation5 + $0x2a0] ss:$8 sps:$4 sm:$0xff]  }
  0x6a   :  { %752 = vmatprep.subr.bf16.mxu0 %v1241_v46  ;;  %709 = vmatprep.subr.bf16.mxu1 %v1317_v0  ;;  %v1334_v46 = vld [vmem:[#allocation5 + $0x2c4] ss:$8 sps:$4 sm:$0xff]  }
  0x6b   :  { %v1365_v62 = vld [vmem:[#allocation7 + $0x30] sm:$0xff]   ;;  %v1367_v0 = vld [vmem:[#allocation7 + $0x38] sm:$0xff]  }
  0x6d   :  { %753 = vmatpush1.bf16.msra.mxu0 %v1243_v47  ;;  %710 = vmatpush1.bf16.msra.mxu1 %v1319_v4  ;;  %v1332_v47 = vld [vmem:[#allocation5 + $0x2c0] ss:$8 sps:$4 sm:$0xff]  }
  0x6e   :  { %754 = vmatprep.subr.bf16.mxu0 %v1247_v50  ;;  %711 = vmatprep.subr.bf16.mxu1 %v1323_v6  ;;  %v1344_v50 = vld [vmem:[#allocation5 + $0x2e4] ss:$8 sps:$4 sm:$0xff]  }
  0x71   :  { %755 = vmatpush1.bf16.msra.mxu0 %v1249_v51  ;;  %712 = vmatpush1.bf16.msra.mxu1 %v1325_v11  ;;  %v1342_v51 = vld [vmem:[#allocation5 + $0x2e0] ss:$8 sps:$4 sm:$0xff]  }
  0x72   :  { %756 = vmatprep.subr.bf16.mxu0 %v1253_v54  ;;  %713 = vmatprep.subr.bf16.mxu1 %v1329_v12  ;;  %v78_v54 = vpack.c.bf16 %v1543_v5, %v1543_v5  ;;  %v179_v12 = vld [vmem:[%s1569_s2] sm:$0x3] }
  0x75   :  { %757 = vmatpush1.bf16.msra.mxu0 %v1255_v55  ;;  %714 = vmatpush1.bf16.msra.mxu1 %v1331_v14  ;;  %v1358_v55 = vld [vmem:[#allocation7 + $0x58] sm:$0xff]  }
  0x76   :  { %767 = vmatprep.subr.bf16.mxu0 %v1262_v58  ;;  %715 = vmatprep.subr.bf16.mxu1 %v1335_v16  ;;  %v1361_v58 = vld [vmem:[#allocation7 + $0x20] sm:$0xff]  }
  0x78   :  { %759 = vmatmul.mubr.bf16.vlgmr.msra.gmra.mrb[0].mxu0 %v76_v61  ;;  %v1364_v61 = vld [vmem:[#allocation7 + $0x70] sm:$0xff]  }
  0x79   :  { %768 = vmatpush1.bf16.msra.mxu0 %v1260_v59  ;;  %799 = vmatprep.mubr.bf16.mxu0 %v79_v10  ;;  %v1362_v59 = vld [vmem:[#allocation7 + $0x68] sm:$0xff]  }
  0x7a   :  { %769 = vmatprep.subr.bf16.mxu0 %v1268_v1  ;;  %716 = vmatpush1.bf16.msra.mxu1 %v1337_v18 }
  0x7b   :  { %808 = vmatprep.subr.bf16.mxu1 %v1347_v20 }
  0x7d   :  { %770 = vmatpush1.bf16.msra.mxu0 %v1266_v3  ;;  %718 = vmatmul.mubr.bf16.vlgmr.msra.gmra.mrb[0].mxu1 %v74_v22 }
  0x7e   :  { %771 = vmatprep.subr.bf16.mxu0 %v1274_v8  ;;  %809 = vmatpush1.bf16.msra.mxu1 %v1345_v23 }
  0x7f   :  { %840 = vmatprep.mubr.bf16.mxu1 %v1469_v27  ;;  %1161 = vmatprep.subr.bf16.mxu1 %v1352_v25 }
  0x81   :  { %772 = vmatpush1.bf16.msra.mxu0 %v1272_v9  ;;  %v181_v9 = vlaneseq }
  0x82   :  { %773 = vmatprep.subr.bf16.mxu0 %v1280_v13 }
  0x83   :  { %v182_v10 = vshrl.u32 %v181_v9, 7 }
  0x85   :  { %774 = vmatpush1.bf16.msra.mxu0 %v1278_v15  ;;  %1143 = vmatmul.mubr.msk.bf16.vlgmr.msra.gmra.mrb[4].mxu1 %vm681_vm0, %v80_v31  ;;  %v183_v11 = vsub.s32 0, %v182_v10  ;;  %v187_v13 = vsub.s32 1, %v182_v10  ;;  %v1144_v31 = vld [vmem:[%s1571_s4] ss:$0 sm:$0xff] }
  0x86   :  { %775 = vmatprep.subr.bf16.mxu0 %v1286_v17  ;;  %1162 = vmatpush3.bf16.msra.mxu1 %v1353_v32 }
  0x87   :  { %1163 = vmatprep.subr.bf16.mxu1 %v1354_v34  ;;  %v184_v14 = vrot.slane %v179_v12, %v183_v11  ;;  %v188_v15 = vrot.slane %v179_v12, %v187_v13 }
  0x89   :  { %776 = vmatpush1.bf16.msra.mxu0 %v1284_v19 }
  0x8a   :  { %777 = vmatprep.subr.bf16.mxu0 %v1292_v21  ;;  %1164 = vmatpush3.bf16.msra.mxu1 %v1355_v36 }
  0x8b   :  { %1165 = vmatprep.subr.bf16.mxu1 %v1356_v38 }
  0x8d   :  { %778 = vmatpush1.bf16.msra.mxu0 %v1290_v24 }
  0x8e   :  { %779 = vmatprep.subr.bf16.mxu0 %v1298_v26  ;;  %1166 = vmatpush3.bf16.msra.mxu1 %v1357_v40 }
  0x8f   :  { %1167 = vmatprep.subr.bf16.mxu1 %v1358_v55 }
  0x91   :  { %780 = vmatpush1.bf16.msra.mxu0 %v1296_v29 }
  0x92   :  { %781 = vmatprep.subr.bf16.mxu0 %v1304_v30  ;;  %1168 = vmatpush3.bf16.msra.mxu1 %v1359_v56 }
  0x93   :  { %1169 = vmatprep.subr.bf16.mxu1 %v1360_v57 }
  0x95   :  { %782 = vmatpush1.bf16.msra.mxu0 %v1302_v33 }
  0x96   :  { %783 = vmatprep.subr.bf16.mxu0 %v1310_v35  ;;  %1170 = vmatpush3.bf16.msra.mxu1 %v1361_v58 }
  0x97   :  { %1171 = vmatprep.subr.bf16.mxu1 %v1362_v59 }
  0x99   :  { %784 = vmatpush1.bf16.msra.mxu0 %v1308_v37 }
  0x9a   :  { %785 = vmatprep.subr.bf16.mxu0 %v1316_v39  ;;  %1172 = vmatpush3.bf16.msra.mxu1 %v1363_v60 }
  0x9b   :  { %1173 = vmatprep.subr.bf16.mxu1 %v1364_v61 }
  0x9d   :  { %786 = vmatpush1.bf16.msra.mxu0 %v1314_v41 }
  0x9e   :  { %787 = vmatprep.subr.bf16.mxu0 %v1322_v42  ;;  %1174 = vmatpush3.bf16.msra.mxu1 %v1365_v62 }
  0x9f   :  { %1175 = vmatprep.subr.bf16.mxu1 %v1366_v63 }
  0xa1   :  { %788 = vmatpush1.bf16.msra.mxu0 %v1320_v43 }
  0xa2   :  { %789 = vmatprep.subr.bf16.mxu0 %v1328_v44  ;;  %1176 = vmatpush3.bf16.msra.mxu1 %v1367_v0 }
  0xa5   :  { %790 = vmatpush1.bf16.msra.mxu0 %v1326_v45 }
  0xa6   :  { %791 = vmatprep.subr.bf16.mxu0 %v1334_v46 }
  0xa9   :  { %792 = vmatpush1.bf16.msra.mxu0 %v1332_v47 }
  0xaa   :  { %793 = vmatprep.subr.bf16.mxu0 %v1340_v48 }
  0xad   :  { %794 = vmatpush1.bf16.msra.mxu0 %v1338_v49 }
  0xae   :  { %795 = vmatprep.subr.bf16.mxu0 %v1344_v50 }
  0xb1   :  { %796 = vmatpush1.bf16.msra.mxu0 %v1342_v51 }
  0xb2   :  { %797 = vmatprep.subr.bf16.mxu0 %v1350_v52 }
  0xb5   :  { %798 = vmatpush1.bf16.msra.mxu0 %v1348_v53 }
  0xb8   :  { %800 = vmatmul.mubr.bf16.vlgmr.msra.gmra.mrb[0].mxu0 %v78_v54 }
 0x150   :  { %v719_v1 = vpop.f32.mrb[0].mxu1 }
 0x151   :  { %v721_v2 = vpop.f32.mrb[1].mxu1  ;;  %v720_v16 = vadd.f32 %v719_v1, %v184_v14 }
 0x152   :  { %v723_v3 = vpop.f32.mrb[2].mxu1  ;;  %v722_v17 = vadd.f32 %v721_v2, %v188_v15 }
 0x153   :  { %v724_v4 = vpop.f32.mrb[3].mxu1 }
 0x158   :  { %v842_v5 = vpop.f32.mrb[4].mxu1 }
 0x159   :  { %v844_v6 = vpop.f32.mrb[5].mxu1 }
 0x15a   :  { %v846_v7 = vpop.f32.mrb[6].mxu1 }
 0x15b   :  { %v847_v8 = vpop.f32.mrb[7].mxu1 }
 0x18b   :  { %v801_v18 = vpop.f32.mrb[0].mxu0 }
 0x18c   :  { %v1184_v19 = vadd.f32 %v801_v18, %v720_v16  ;;  %v803_v20 = vpop.f32.mrb[1].mxu0 }
 0x18d   :  { %v1187_v21 = vadd.f32 %v803_v20, %v722_v17  ;;  %v805_v22 = vpop.f32.mrb[2].mxu0 }
 0x18e   :  { %v1185_v23 = vadd.f32 %v1184_v19, %v842_v5  ;;  %v806_v24 = vpop.f32.mrb[3].mxu0 }
 0x18f   :  { %v1188_v25 = vadd.f32 %v1187_v21, %v844_v6 }
 0x190   :  { %v849_v26 = vmax.f32 %v1185_v23, 0.0 }
 0x191   :  { %v850_v27 = vmax.f32 %v1188_v25, 0.0 }
 0x192   :  { %v851_v29 = vpack.c.bf16 %v849_v26, %v849_v26 }
 0x193   :  { %v852_v28 = vpack.c.bf16 %v850_v27, %v850_v27 }
 0x195   :  { %1020 = vmatprep.mubr.bf16.mxu1 %v852_v28 }
 0x196   :  { %1021 = vmatmul.mubr.bf16.vlgmr.msra.gmra.mrb[8].mxu1 %v851_v29 }
 0x269   :  { %v1177_v30 = vpop.f32.mrb[8].mxu1 }
 0x26a   :  { %v1178_v32 = vpop.f32.mrb[9].mxu1 }
 0x26b   :  { %v1179_v33 = vadd.f32 %v1178_v32, %v1177_v30  ;;  %v1180_v34 = vpop.f32.mrb[10].mxu1 }
 0x26c   :  { %v1181_v35 = vpop.f32.mrb[11].mxu1 }
 0x26d   :  { %v1023_v36 = vadd.f32 %v1179_v33, %v1144_v31 }
 0x26f   :  { %1028 = vst [vmem:[#allocation8] sm:$0xf] %v1023_v36 }
 0x270   :  { %1445 = shalt.err (!%p1442_p0)
}
 0x271   :  { %s1446_s4 = scalar_lea.hbm %s1572_s5, 64 }
 0x272   :  { %p1447_p1 = scmp.ne.s32.totalorder %s1572_s5, %s1446_s4  ;;  %p1450_p2 = scmp.lt.u32.totalorder %s1446_s4, %s1572_s5 }
 0x274   :  { %p1452_p3 = pnand %p1450_p2, %p1447_p1 }
 0x276   :  { %1455 = shalt.err (!%p1452_p3)
}
 0x277   :  { %1038 = dma.vmem_to_hbm [thread:$0]  %s1036_s9, 64, %s1572_s5, [#allocation4]  }
 0x278   :  { %1460 = dma.done.wait [#allocation4], 64  }
 0x279   :  { %1461 = vsyncadd [#allocation4], 4294967232 }
 0x27a   :  { %1042 = vsyncpa [#allocation3], 1 }
 0x27b   :  { %1043 = vsyncpa [#allocation6], 1 }
 0x27c   :  { %1044 = vsyncpa [#allocation4], 1 }

</bundles_post_ra>
